<compile_context>
chip_gen: v7x
topology: tpu7x:2x2x1
jax: 0.10.0
libtpu: 0.0.40
codegen_flags: <defaults>
</compile_context>

<pallas_src>
import jax
import jax.numpy as jnp
from jax.experimental import pallas as pl
from jax.experimental.pallas import tpu as pltpu


# ----------------------------- wrapper-side precompute -----------------------------

def _keys_cubic(d):
    # PIL's bicubic kernel (Keys cubic, a = -0.5); d is a non-negative distance.
    d2 = d * d
    d3 = d2 * d
    near = 1.5 * d3 - 2.5 * d2 + 1.0              # 0 <= d <= 1
    far = -0.5 * d3 + 2.5 * d2 - 4.0 * d + 2.0    # 1 <  d <= 2
    return jnp.where(d <= 1.0, near, jnp.where(d < 2.0, far, 0.0))


def _sampling_matrices(H, W, factor, fill_value):
    """Vectorized over all H rows (factor static -> XLA constant-folds).

    Returns:
      S_img: (H, W, W)  bicubic weights, S_img[y, xi, xo].
      S_lab: (H, W, W)  nearest-neighbor 0/1 selection.
      fill:  (H, 1, W)  fill_value where the nearest source column is OOB.
    """
    y = jnp.arange(H, dtype=jnp.float32)[:, None, None]           # (H,1,1)
    delta = (y + 0.5) * jnp.float32(factor)                       # pixel-center shear
    xi = jnp.arange(W, dtype=jnp.float32)[None, :, None]          # source column
    xo = jnp.arange(W, dtype=jnp.float32)[None, None, :]          # output column

    # bicubic (image path): continuous source x = xo + factor*(y+0.5)
    sx = xo + delta                                               # (H,1,W)
    fl = jnp.floor(sx)
    t = sx - fl
    in_bounds = ((sx >= 0.0) & (sx < float(W))).astype(jnp.float32)

    S_img = jnp.zeros((H, W, W), jnp.float32)
    for k, dist in ((-1, 1.0 + t), (0, t), (1, 1.0 - t), (2, 2.0 - t)):
        tap = jnp.clip(fl + float(k), 0.0, float(W - 1))          # clamp taps at edges
        S_img = S_img + _keys_cubic(dist) * (xi == tap).astype(jnp.float32)
    S_img = S_img * in_bounds                                     # OOB -> 0 (image default)

    # nearest (label path): source x = floor(xo + 0.5 + factor*(y+0.5))
    src = jnp.floor(xo + 0.5 + delta)                             # (H,1,W)
    valid = (src >= 0.0) & (src < float(W))
    S_lab = (valid & (xi == src)).astype(jnp.float32)             # (H,W,W)
    fill = jnp.where(valid, 0.0, jnp.float32(fill_value))         # (H,1,W)
    return S_img, S_lab, fill


def _block_diag(S, tile_h):
    """(H, W, W) -> (H//tile_h, tile_h*W, tile_h*W) block-diagonal matrices."""
    H, W, _ = S.shape
    hb = H // tile_h
    S = S.reshape(hb, tile_h, W, W)
    eye = jnp.eye(tile_h, dtype=S.dtype)
    bd = jnp.einsum('bixy,ij->bixjy', S, eye)     # bd[b, i*W+xi, j*W+xo]
    return bd.reshape(hb, tile_h * W, tile_h * W)


def _pick_tile_h_blockdiag(H, W):
    """Block-diag path (W < 128): smallest tile_h whose packed lane width is a
    128 multiple (block-diag weight bytes grow linearly with tile_h, so small
    is better); fall back to the full H*W extent (always BlockSpec-legal)."""
    for t in range(1, H + 1):
        if H % t == 0 and (t * W) % 128 == 0:
            return t
    return H  # TW == H*W == full last-dim extent -> legal, single grid step


def _pick_tile_h_compact(H, W, nc_rows, n_rows):
    """Compact path (W >= 128): largest sublane-friendly row group whose
    double-buffered per-step footprint stays well under v7x's 64 MiB VMEM."""
    budget = 24 << 20
    candidates = [t for t in range(1, H + 1)
                  if H % t == 0 and (t % 8 == 0 or t == H)]

    def step_bytes(t):
        weights = 2 * t * W * W * 2                   # S_img + S_lab (bf16)
        img_io = 2 * nc_rows * t * W * 4              # image in + out (f32)
        lab_io = 2 * n_rows * t * W * 4               # label in + out (i32)
        fill_b = t * W * 4
        return 2 * (weights + img_io + lab_io + fill_b)   # double-buffered

    fitting = [t for t in candidates if step_bytes(t) <= budget]
    return max(fitting) if fitting else min(candidates)


def _vmem_limit(step_bytes):
    # explicit budget (review): >= default scoped, <= v7x 64 MiB physical.
    return int(min(64 << 20, max(32 << 20, 1.75 * step_bytes + (2 << 20))))


# ----------------------------------- kernels -----------------------------------

def _shearx_packed_kernel(img_ref, lab_ref, simg_ref, slab_ref, fill_ref,
                          oimg_ref, olab_ref):
    """Lane-packed path: one (NC, TW) x (TW, TW) matmul per step."""
    x = img_ref[...].astype(jnp.bfloat16)                         # in-kernel cast
    oimg_ref[...] = jnp.dot(
        x, simg_ref[0], preferred_element_type=jnp.float32).astype(oimg_ref.dtype)

    lab = lab_ref[...].astype(jnp.float32).astype(slab_ref.dtype)
    o = jnp.dot(lab, slab_ref[0], preferred_element_type=jnp.float32) + fill_ref[0]
    olab_ref[...] = o.astype(olab_ref.dtype)                      # exact; no round


def _make_compact_kernel(tile_h):
    """Compact path: tile_h independent (rows, W) x (W, W) matmuls per step."""
    def kernel(img_ref, lab_ref, simg_ref, slab_ref, fill_ref,
               oimg_ref, olab_ref):
        for h in range(tile_h):                                   # static unroll
            x = img_ref[:, h, :].astype(jnp.bfloat16)             # (NC, W)
            oimg_ref[:, h, :] = jnp.dot(
                x, simg_ref[0, h],
                preferred_element_type=jnp.float32).astype(oimg_ref.dtype)

            lab = lab_ref[:, h, :].astype(jnp.float32).astype(slab_ref.dtype)
            o = (jnp.dot(lab, slab_ref[0, h],
                         preferred_element_type=jnp.float32)
                 + fill_ref[:, h, :])                             # (1, W) broadcast
            olab_ref[:, h, :] = o.astype(olab_ref.dtype)
    return kernel


# ----------------------------------- wrapper -----------------------------------

def shear_x(image, label, *, factor, fill_value, small_labels=True):
    """image: (N, C, H, W) float32; label: (N, H, W) int32.  Returns sheared pair.

    small_labels=True uses bf16 for the label selection matmul (exact for
    class IDs < 256); set False for arbitrary int payloads (f32 path).
    """
    N, C, H, W = image.shape
    NC = N * C
    lab_wdtype = jnp.bfloat16 if small_labels else jnp.float32

    S_img, S_lab, fill = _sampling_matrices(H, W, factor, fill_value)

    if W >= 128:
        # ---------------- compact per-row weights (no block-diag inflation) ----------------
        tile_h = _pick_tile_h_compact(H, W, NC, N)
        HB = H // tile_h
        simg = S_img.reshape(HB, tile_h, W, W).astype(jnp.bfloat16)
        slab = S_lab.reshape(HB, tile_h, W, W).astype(lab_wdtype)
        fillb = fill.reshape(HB, tile_h, W)

        img3 = image.reshape(NC, H, W)                 # free reshape (NCHW contiguous)

        step_bytes = 2 * (tile_h * W * W * (2 + slab.dtype.itemsize)
                          + 2 * NC * tile_h * W * 4
                          + 2 * N * tile_h * W * 4
                          + tile_h * W * 4)

        img_out, lab_out = pl.pallas_call(
            _make_compact_kernel(tile_h),
            out_shape=(jax.ShapeDtypeStruct((NC, H, W), image.dtype),
                       jax.ShapeDtypeStruct((N, H, W), label.dtype)),
            grid=(HB,),
            in_specs=[pl.BlockSpec((NC, tile_h, W), lambda b: (0, b, 0)),
                      pl.BlockSpec((N, tile_h, W), lambda b: (0, b, 0)),
                      pl.BlockSpec((1, tile_h, W, W), lambda b: (b, 0, 0, 0)),
                      pl.BlockSpec((1, tile_h, W, W), lambda b: (b, 0, 0, 0)),
                      pl.BlockSpec((1, tile_h, W), lambda b: (b, 0, 0))],
            out_specs=(pl.BlockSpec((NC, tile_h, W), lambda b: (0, b, 0)),
                       pl.BlockSpec((N, tile_h, W), lambda b: (0, b, 0))),
            compiler_params=pltpu.CompilerParams(
                dimension_semantics=("parallel",),
                vmem_limit_bytes=_vmem_limit(step_bytes)),
        )(img3, label, simg, slab, fillb)
        return img_out.reshape(N, C, H, W), lab_out

    # ---------------- lane-packed block-diagonal path (tiny W) ----------------
    tile_h = _pick_tile_h_blockdiag(H, W)
    HB = H // tile_h
    TW = tile_h * W

    simg = _block_diag(S_img, tile_h).astype(jnp.bfloat16)        # (HB, TW, TW)
    slab = _block_diag(S_lab, tile_h).astype(lab_wdtype)          # (HB, TW, TW)
    fillb = fill.reshape(HB, 1, TW)

    img_flat = image.reshape(NC, H * W)                           # free reshapes
    lab_flat = label.reshape(N, H * W)

    step_bytes = 2 * (TW * TW * (2 + slab.dtype.itemsize)
                      + 2 * NC * TW * 4 + 2 * N * TW * 4 + TW * 4)

    img_out, lab_out = pl.pallas_call(
        _shearx_packed_kernel,
        out_shape=(jax.ShapeDtypeStruct((NC, H * W), image.dtype),
                   jax.ShapeDtypeStruct((N, H * W), label.dtype)),
        grid=(HB,),
        in_specs=[pl.BlockSpec((NC, TW), lambda b: (0, b)),
                  pl.BlockSpec((N, TW), lambda b: (0, b)),
                  pl.BlockSpec((1, TW, TW), lambda b: (b, 0, 0)),
                  pl.BlockSpec((1, TW, TW), lambda b: (b, 0, 0)),
                  pl.BlockSpec((1, 1, TW), lambda b: (b, 0, 0))],
        out_specs=(pl.BlockSpec((NC, TW), lambda b: (0, b)),
                   pl.BlockSpec((N, TW), lambda b: (0, b))),
        compiler_params=pltpu.CompilerParams(
            dimension_semantics=("parallel",),
            vmem_limit_bytes=_vmem_limit(step_bytes)),
    )(img_flat, lab_flat, simg, slab, fillb)

    return img_out.reshape(N, C, H, W), lab_out.reshape(N, H, W)


# ----------------------------------- reference -----------------------------------

def shear_x_reference(image, label, *, factor, fill_value):
    """Pure-JAX f32 reference with identical sampling-matrix semantics."""
    N, C, H, W = image.shape
    S_img, S_lab, fill = _sampling_matrices(H, W, factor, fill_value)
    img_o = jnp.einsum('nchw,hwv->nchv', image, S_img)
    lab_o = (jnp.einsum('nhw,hwv->nhv', label.astype(jnp.float32), S_lab)
             + fill[None, :, 0, :])
    return img_o, lab_o.astype(label.dtype)


if __name__ == "__main__":
    # ShearX(factor=0.3, fill_value=7, distribution='constant', interpolation=BICUBIC)
    factor = 0.3
    fill_value = 7

    key = jax.random.PRNGKey(0)
    k1, k2, k3, k4 = jax.random.split(key, 4)

    # --- tiny-W demo (lane-packed block-diagonal path) ---
    N, C, H, W = 2, 4, 16, 16
    image = jax.random.uniform(k1, (N, C, H, W), dtype=jnp.float32)
    label = jax.random.randint(k2, (N, H, W), 0, 10, dtype=jnp.int32)

    img_out, lab_out = shear_x(image, label, factor=factor, fill_value=fill_value)
    jax.block_until_ready((img_out, lab_out))
    img_ref, lab_ref = shear_x_reference(image, label, factor=factor, fill_value=fill_value)
    assert img_out.shape == (N, C, H, W) and lab_out.shape == (N, H, W)
    assert jnp.allclose(img_out, img_ref, atol=2e-2, rtol=2e-2)   # bf16 MXU image path
    assert jnp.array_equal(lab_out, lab_ref)

    # --- wide-W check (compact per-row-weights path, W >= 128) ---
    N2, C2, H2, W2 = 1, 2, 8, 128
    image2 = jax.random.uniform(k3, (N2, C2, H2, W2), dtype=jnp.float32)
    label2 = jax.random.randint(k4, (N2, H2, W2), 0, 10, dtype=jnp.int32)

    img2_out, lab2_out = shear_x(image2, label2, factor=factor, fill_value=fill_value)
    jax.block_until_ready((img2_out, lab2_out))
    img2_ref, lab2_ref = shear_x_reference(image2, label2, factor=factor, fill_value=fill_value)
    assert img2_out.shape == (N2, C2, H2, W2) and lab2_out.shape == (N2, H2, W2)
    assert jnp.allclose(img2_out, img2_ref, atol=2e-2, rtol=2e-2)
    assert jnp.array_equal(lab2_out, lab2_ref)

    print("KERNEL_OK")
</pallas_src>

<mosaic_0001>
module attributes {stable_mosaic.version = 11 : i64} {
  func.func @_shearx_packed_kernel(%arg0: i32, %arg1: memref<8x128xf32, #tpu.memory_space<vmem>>, %arg2: memref<2x128xi32, #tpu.memory_space<vmem>>, %arg3: memref<1x128x128xbf16, #tpu.memory_space<vmem>>, %arg4: memref<1x128x128xbf16, #tpu.memory_space<vmem>>, %arg5: memref<1x1x128xf32, #tpu.memory_space<vmem>>, %arg6: memref<8x128xf32, #tpu.memory_space<vmem>>, %arg7: memref<2x128xi32, #tpu.memory_space<vmem>>) attributes {dimension_semantics = [#tpu.dimension_semantics<parallel>], iteration_bounds = array<i64: 2>, scalar_prefetch = 0 : i64, scratch_operands = 0 : i64, tpu.core_type = #tpu.core_type<tc>, window_params = [{transform_indices = @transform_0, window_bounds = array<i64: 8, 128>}, {transform_indices = @transform_1, window_bounds = array<i64: 2, 128>}, {transform_indices = @transform_2, window_bounds = array<i64: 1, 128, 128>}, {transform_indices = @transform_3, window_bounds = array<i64: 1, 128, 128>}, {transform_indices = @transform_4, window_bounds = array<i64: 1, 1, 128>}, {transform_indices = @transform_5, window_bounds = array<i64: 8, 128>}, {transform_indices = @transform_6, window_bounds = array<i64: 2, 128>}]} {
    %c0 = arith.constant 0 : index
    %c0_0 = arith.constant 0 : index
    %0 = vector.load %arg1[%c0, %c0_0] : memref<8x128xf32, #tpu.memory_space<vmem>>, vector<8x128xf32>
    %1 = arith.truncf %0 : vector<8x128xf32> to vector<8x128xbf16>
    %c0_1 = arith.constant 0 : index
    %c0_2 = arith.constant 0 : index
    %c0_3 = arith.constant 0 : index
    %2 = vector.load %arg3[%c0_1, %c0_2, %c0_3] : memref<1x128x128xbf16, #tpu.memory_space<vmem>>, vector<1x128x128xbf16>
    %3 = vector.shape_cast %2 : vector<1x128x128xbf16> to vector<128x128xbf16>
    %cst = arith.constant dense<0.000000e+00> : vector<8x128xf32>
    %4 = tpu.matmul %1, %3, %cst {dimension_numbers = #tpu.dot_dimension_numbers<[1], [0], [0], [1], [0, 0, 1, 1], [], []>} : vector<8x128xbf16>, vector<128x128xbf16>, vector<8x128xf32> -> vector<8x128xf32>
    %c0_4 = arith.constant 0 : index
    %c0_5 = arith.constant 0 : index
    %5 = vector.load %arg6[%c0_4, %c0_5] : memref<8x128xf32, #tpu.memory_space<vmem>>, vector<8x128xf32>
    tpu.vector_store %arg6[%c0_4, %c0_5], %4 {strides = array<i32>} : memref<8x128xf32, #tpu.memory_space<vmem>>, vector<8x128xf32>,
    %c0_6 = arith.constant 0 : index
    %c0_7 = arith.constant 0 : index
    %6 = vector.load %arg2[%c0_6, %c0_7] : memref<2x128xi32, #tpu.memory_space<vmem>>, vector<2x128xi32>
    %7 = arith.sitofp %6 : vector<2x128xi32> to vector<2x128xf32>
    %8 = arith.truncf %7 : vector<2x128xf32> to vector<2x128xbf16>
    %c0_8 = arith.constant 0 : index
    %c0_9 = arith.constant 0 : index
    %c0_10 = arith.constant 0 : index
    %9 = vector.load %arg4[%c0_8, %c0_9, %c0_10] : memref<1x128x128xbf16, #tpu.memory_space<vmem>>, vector<1x128x128xbf16>
    %10 = vector.shape_cast %9 : vector<1x128x128xbf16> to vector<128x128xbf16>
    %cst_11 = arith.constant dense<0.000000e+00> : vector<2x128xf32>
    %11 = tpu.matmul %8, %10, %cst_11 {dimension_numbers = #tpu.dot_dimension_numbers<[1], [0], [0], [1], [0, 0, 1, 1], [], []>} : vector<2x128xbf16>, vector<128x128xbf16>, vector<2x128xf32> -> vector<2x128xf32>
    %c0_12 = arith.constant 0 : index
    %c0_13 = arith.constant 0 : index
    %c0_14 = arith.constant 0 : index
    %12 = vector.load %arg5[%c0_12, %c0_13, %c0_14] : memref<1x1x128xf32, #tpu.memory_space<vmem>>, vector<1x1x128xf32>
    %13 = vector.shape_cast %12 : vector<1x1x128xf32> to vector<1x128xf32>
    %14 = vector.broadcast %13 : vector<1x128xf32> to vector<2x128xf32>
    %15 = arith.addf %11, %14 : vector<2x128xf32>
    %16 = arith.fptosi %15 : vector<2x128xf32> to vector<2x128xi32>
    %c0_15 = arith.constant 0 : index
    %c0_16 = arith.constant 0 : index
    %17 = vector.load %arg7[%c0_15, %c0_16] : memref<2x128xi32, #tpu.memory_space<vmem>>, vector<2x128xi32>
    tpu.vector_store %arg7[%c0_15, %c0_16], %16 {strides = array<i32>} : memref<2x128xi32, #tpu.memory_space<vmem>>, vector<2x128xi32>,
    return
  }
  func.func @transform_0(%arg0: i32) -> (i32, i32) {
    %c0_i32 = arith.constant 0 : i32
    %c0_i32_0 = arith.constant 0 : i32
    return %c0_i32, %arg0 : i32, i32
  }
  func.func @transform_1(%arg0: i32) -> (i32, i32) {
    %c0_i32 = arith.constant 0 : i32
    %c0_i32_0 = arith.constant 0 : i32
    return %c0_i32, %arg0 : i32, i32
  }
  func.func @transform_2(%arg0: i32) -> (i32, i32, i32) {
    %c0_i32 = arith.constant 0 : i32
    %c0_i32_0 = arith.constant 0 : i32
    %c0_i32_1 = arith.constant 0 : i32
    return %arg0, %c0_i32, %c0_i32_0 : i32, i32, i32
  }
  func.func @transform_3(%arg0: i32) -> (i32, i32, i32) {
    %c0_i32 = arith.constant 0 : i32
    %c0_i32_0 = arith.constant 0 : i32
    %c0_i32_1 = arith.constant 0 : i32
    return %arg0, %c0_i32, %c0_i32_0 : i32, i32, i32
  }
  func.func @transform_4(%arg0: i32) -> (i32, i32, i32) {
    %c0_i32 = arith.constant 0 : i32
    %c0_i32_0 = arith.constant 0 : i32
    %c0_i32_1 = arith.constant 0 : i32
    return %arg0, %c0_i32, %c0_i32_0 : i32, i32, i32
  }
  func.func @transform_5(%arg0: i32) -> (i32, i32) {
    %c0_i32 = arith.constant 0 : i32
    %c0_i32_0 = arith.constant 0 : i32
    return %c0_i32, %arg0 : i32, i32
  }
  func.func @transform_6(%arg0: i32) -> (i32, i32) {
    %c0_i32 = arith.constant 0 : i32
    %c0_i32_0 = arith.constant 0 : i32
    return %c0_i32, %arg0 : i32, i32
  }
}

</mosaic_0001>

<bundles_post_ra>
// kernel: tpu_custom_call.1
= control target key start
LH: loop header
LB: loop body
LE: loop exit
PB: predicated region body
PF: predicated region fallthrough
CT: control target
= control target key end

     0   :  { %s1667_s0 = inlined_call_operand.hbm [shape: f32[8,256], index: 0, kind: input, shape index: {}]   ;;  %s1668_s1 = inlined_call_operand.hbm [shape: s32[2,256], index: 1, kind: input, shape index: {}]   ;;  %s1669_s2 = inlined_call_operand.hbm [shape: bf16[2,128,128], index: 2, kind: input, shape index: {}]   ;;  %s1670_s3 = inlined_call_operand.hbm [shape: bf16[2,128,128], index: 3, kind: input, shape index: {}]   ;;  %s1671_s4 = inlined_call_operand.vmem [shape: f32[2,1,128], index: 4, kind: input, shape index: {}]   ;;  %s1672_s5 = inlined_call_operand.hbm [shape: f32[8,256], index: 5, kind: output, shape index: {0}]   ;;  %s1673_s6 = inlined_call_operand.hbm [shape: s32[2,256], index: 6, kind: output, shape index: {1}]  }
   0x1   :  { %1677 = sst [smem:[#allocation20_spill]] %s1667_s0 }
   0x2   :  { %1678 = sst [smem:[#allocation21_spill]] %s1668_s1 }
   0x3   :  { %12 = vsyncpa [#allocation3], 0 }
   0x4   :  { %14 = vsyncpa [#allocation3 + $0x1], 0 }
   0x5   :  { %15 = vsyncpa [#allocation6], 0 }
   0x6   :  { %17 = vsyncpa [#allocation6 + $0x1], 0 }
   0x7   :  { %18 = vsyncpa [#allocation9], 0 }
   0x8   :  { %20 = vsyncpa [#allocation9 + $0x1], 0 }
   0x9   :  { %21 = vsyncpa [#allocation4], 0 }
   0xa   :  { %23 = vsyncpa [#allocation4 + $0x1], 0 }
   0xb   :  { %24 = vsyncpa [#allocation12], 0 }
   0xc   :  { %26 = vsyncpa [#allocation12 + $0x1], 0  ;;  %s1303_s21 = smov 0   ;;  %s1305_s22 = smov 0  }
   0xd   :  { %s1307_s23 = smov 0   ;;  %s1309_s24 = smov 0  }
   0xe LB: > { %1679 = sst [smem:[#allocation18_spill]] %s1252_s23  ;;  %s1324_s25 = sadd.s32 4294967295, %s1256_s24   ;;  %s1256_s24 = sphi %s1309_s24, %s1699_s24   ;;  %s1252_s23 = sphi %s1307_s23, %s1696_s23   ;;  %s1248_s22 = sphi %s1305_s22, %s1698_s22   ;;  %s1244_s21 = sphi %s1303_s21, %s1697_s21  }
   0xf   : > { %s839_s26 = sadd.s32 4294967294, %s1256_s24   ;;  %s1328_s27 = sadd.s32 1, %s1256_s24  }
  0x10   : > { %s39_s28 = sadd.s32 1, %s1252_s23  ;;  %s36_s29 = ssub.s32 %s1256_s24, %s1328_s27 }
  0x11   : > { %p46_p0 = scmp.ne.s32.totalorder %s1252_s23, %s1248_s22  ;;  %p37_p1 = scmp.eq.s32.totalorder %s36_s29, 0 }
  0x12   : > { %p47_p2 = scmp.eq.s32.totalorder %s1256_s24, 0  ;;  %p52_p3 = scmp.ne.s32.totalorder %s1248_s22, %s1244_s21 }
  0x13   : > { %p53_p4 = scmp.eq.s32.totalorder %s1324_s25, 0  ;;  %p180_p7 = scmp.eq.s32.totalorder %s1324_s25, 1 }
  0x14   : > { %s1340_s30 = scalar_select %p37_p1, %s1252_s23, %s39_s28  }
  0x15   : > { %p48_p5 = por %p47_p2, %p46_p0  ;;  %p1342_p6 = por %p53_p4, %p52_p3 }
  0x16   : > { %1680 = sst [smem:[#allocation19_spill]] %s1340_s30  ;;  %p186_p8 = scmp.eq.s32.totalorder %s839_s26, 1 }
  0x17   : > { %s1681_s7 = scalar_select %p1342_p6, 1, 0 }
  0x18   : > { %p976_p10 = scmp.lt.s32.totalorder %s1256_s24, 2  ;;  %p1349_p11 = por %p180_p7, %p46_p0 }
  0x19   : > { %p1353_p12 = por %p186_p8, %p52_p3  ;;  %s1358_s10 = sand.u32 1, %s1252_s23  }
  0x1a   : > { %s1682_s8 = scalar_select %p1349_p11, 1, 0 }
  0x1b   : > { %s1683_s9 = scalar_select %p1353_p12, 1, 0 }
  0x1c   : > { %p1360_p13 = pnand %p976_p10, %p48_p5  ;;  %s250_s12 = sand.u32 1, %s1256_s24  }
  0x1d   : > { %s844_s13 = sshll.u32 %s1358_s10, 1  ;;  %s845_s14 = sshll.u32 %s1256_s24, 5 }
  0x1e   : > { %s1685_s1 = sld [smem:[#allocation21_spill]]  ;;  %s254_s18 = scalar_lea.vmem [#allocation5], %s844_s13 }
  0x1f   : > { %s261_s19 = sshll.u32 %s254_s18, 4  ;;  %s1375_s20 = scalar_lea.sflag [#allocation6], %s250_s12  ;;  %s1372_s19 = int_to_ptr.vmem [resolvable:$true] %s261_s19 }
  0x20   : > { %p1381_p2 = pneg %p1360_p13 }
  0x24   : > { %s1370_s17 = scalar_lea.hbm %s1685_s1, %s845_s14  ;;  %s1035_s13 = scalar_lea.hbm %s1685_s1, 64 }
  0x25   : > { %s1030_s26 = scalar_lea.hbm %s1370_s17, 32  ;;  %p1036_p5 = scmp.lt.u32.totalorder %s1370_s17, %s1685_s1 }
  0x26   : > { %p1031_p1 = scmp.ne.s32.totalorder %s1370_s17, %s1030_s26  ;;  %p1037_p7 = scmp.lt.u32.totalorder %s1035_s13, %s1030_s26 }
  0x27   : > { %p1039_p10 = scmp.lt.u32.totalorder %s1030_s26, %s1370_s17 }
  0x28   : > { %p1033_p3 = pnand %p1381_p2, %p1031_p1  ;;  %p1038_p8 = por %p1037_p7, %p1036_p5 }
  0x2a   : > { %p1034_p4 = pneg %p1033_p3  ;;  %p1040_p9 = por %p1039_p10, %p1038_p8 }
  0x2c   : > { %p1041_p0 = pnand %p1040_p9, %p1034_p4 }
  0x2e   : > { %1044 = shalt.err (!%p1041_p0)
}
  0x2f   : > { %s1045_s12 = scalar_lea.vmem %s1372_s19, 32  ;;  %s1258_s18 = smov [#allocation5]  }
  0x30   : > { %p1046_p1 = scmp.ne.s32.totalorder %s1372_s19, %s1045_s12  ;;  %s1050_s29 = sshll.u32 %s1258_s18, 4  ;;  %s1051_s29 = int_to_ptr.vmem [resolvable:$false] %s1050_s29 }
  0x31   : > { %s1052_s14 = scalar_lea.vmem %s1051_s29, 64  ;;  %p1053_p11 = scmp.lt.s32.totalorder %s1372_s19, %s1051_s29 }
  0x32   : > { %p1048_p3 = pnand %p1046_p1, %p1381_p2  ;;  %p1054_p6 = scmp.lt.s32.totalorder %s1052_s14, %s1045_s12 }
  0x34   : > { %p1049_p12 = pneg %p1048_p3  ;;  %p1055_p5 = por %p1054_p6, %p1053_p11 }
  0x36   : > { %p1056_p7 = pnand %p1055_p5, %p1049_p12 }
  0x38   : > { %1059 = shalt.err (!%p1056_p7)
}
  0x39   : > { %962 = dma.hbm_to_vmem [thread:$0]  (!%p1360_p13), %s1370_s17, 32, %s1372_s19, %s1375_s20  }
  0x3a   : > { %p314_p9 = scmp.lt.s32.totalorder %s1256_s24, 3  ;;  %s842_s26 = sshll.u32 %s1358_s10, 3 }
  0x3b   : > { %s843_s13 = sshll.u32 %s1256_s24, 7  ;;  %p1687_p0 = scmp.ge.s32.totalorder %s1256_s24, 1 }
  0x3c   : > { %s1689_s0 = sld [smem:[#allocation20_spill]]  ;;  %s236_s29 = scalar_lea.vmem [#allocation2], %s842_s26 }
  0x3d   : > { %p1410_p6 = pnand %p1687_p0, %p314_p9  ;;  %s243_s14 = sshll.u32 %s236_s29, 4  ;;  %s1419_s14 = int_to_ptr.vmem [resolvable:$true] %s243_s14 }
  0x3e   : > { %s846_s17 = sshll.u32 %s1358_s10, 6  ;;  %s233_s19 = scalar_lea.sflag [#allocation3], %s1358_s10 }
  0x3f   : > { %s1688_s15 = scalar_select %p1410_p6, 1, 0 }
  0x42   : > { %s1417_s18 = scalar_lea.hbm %s1689_s0, %s843_s13  ;;  %s1065_s13 = scalar_lea.hbm %s1689_s0, 256 }
  0x43   : > { %s1060_s1 = scalar_lea.hbm %s1417_s18, 128  ;;  %p1066_p8 = scmp.lt.u32.totalorder %s1417_s18, %s1689_s0 }
  0x44   : > { %p1061_p11 = scmp.ne.s32.totalorder %s1417_s18, %s1060_s1  ;;  %p1067_p10 = scmp.lt.u32.totalorder %s1065_s13, %s1060_s1 }
  0x45   : > { %p1069_p3 = scmp.lt.u32.totalorder %s1060_s1, %s1417_s18 }
  0x46   : > { %p1063_p12 = pnand %p1061_p11, %p1381_p2  ;;  %p1068_p1 = por %p1067_p10, %p1066_p8 }
  0x48   : > { %p1064_p4 = pneg %p1063_p12  ;;  %p1070_p5 = por %p1069_p3, %p1068_p1 }
  0x4a   : > { %p1071_p7 = pnand %p1070_p5, %p1064_p4 }
  0x4c   : > { %1074 = shalt.err (!%p1071_p7)
}
  0x4d   : > { %s1075_s26 = scalar_lea.vmem %s1419_s14, 128  ;;  %s1259_s23 = smov [#allocation2]  }
  0x4e   : > { %p1076_p9 = scmp.ne.s32.totalorder %s1419_s14, %s1075_s26  ;;  %s1080_s30 = sshll.u32 %s1259_s23, 4  ;;  %s1081_s30 = int_to_ptr.vmem [resolvable:$false] %s1080_s30 }
  0x4f   : > { %s1082_s29 = scalar_lea.vmem %s1081_s30, 256  ;;  %p1083_p12 = scmp.lt.s32.totalorder %s1419_s14, %s1081_s30 }
  0x50   : > { %p1078_p0 = pnand %p1076_p9, %p1381_p2  ;;  %p1084_p6 = scmp.lt.s32.totalorder %s1082_s29, %s1075_s26 }
  0x52   : > { %p1079_p11 = pneg %p1078_p0  ;;  %p1085_p8 = por %p1084_p6, %p1083_p12 }
  0x54   : > { %p1086_p10 = pnand %p1085_p8, %p1079_p11 }
  0x56   : > { %1089 = shalt.err (!%p1086_p10)
}
  0x57   : > { %959 = dma.hbm_to_vmem [thread:$0]  (!%p1360_p13), %s1417_s18, 128, %s1419_s14, %s233_s19  }
  0x58   : > { %s882_s1 = sshll.u32 %s1256_s24, 10  ;;  %s272_s26 = scalar_lea.vmem [#allocation7], %s846_s17 }
  0x59   : > { %s1450_s12 = scalar_lea.hbm %s1669_s2, %s882_s1  ;;  %s279_s23 = sshll.u32 %s272_s26, 4  ;;  %s1454_s23 = int_to_ptr.vmem [resolvable:$true] %s279_s23 }
  0x5a   : > { %s1090_s30 = scalar_lea.hbm %s1450_s12, 1024  ;;  %s1095_s19 = scalar_lea.hbm %s1669_s2, 2048 }
  0x5b   : > { %p1091_p6 = scmp.ne.s32.totalorder %s1450_s12, %s1090_s30  ;;  %p1096_p3 = scmp.lt.u32.totalorder %s1450_s12, %s1669_s2 }
  0x5c   : > { %p1097_p5 = scmp.lt.u32.totalorder %s1095_s19, %s1090_s30  ;;  %p1099_p9 = scmp.lt.u32.totalorder %s1090_s30, %s1450_s12 }
  0x5d   : > { %p1093_p4 = pnand %p1091_p6, %p1381_p2 }
  0x5e   : > { %p1098_p7 = por %p1097_p5, %p1096_p3 }
  0x5f   : > { %p1094_p1 = pneg %p1093_p4 }
  0x60   : > { %p1100_p0 = por %p1099_p9, %p1098_p7 }
  0x62   : > { %p1101_p11 = pnand %p1100_p0, %p1094_p1 }
  0x64   : > { %1104 = shalt.err (!%p1101_p11)
}
  0x65   : > { %s1105_s16 = scalar_lea.vmem %s1454_s23, 1024  ;;  %s1260_s26 = smov [#allocation7]  }
  0x66   : > { %p1106_p12 = scmp.ne.s32.totalorder %s1454_s23, %s1105_s16  ;;  %s1110_s18 = sshll.u32 %s1260_s26, 4  ;;  %s1111_s18 = int_to_ptr.vmem [resolvable:$false] %s1110_s18 }
  0x67   : > { %s1112_s14 = scalar_lea.vmem %s1111_s18, 2048  ;;  %p1113_p6 = scmp.lt.s32.totalorder %s1454_s23, %s1111_s18 }
  0x68   : > { %p1108_p8 = pnand %p1106_p12, %p1381_p2  ;;  %p1114_p4 = scmp.lt.s32.totalorder %s1112_s14, %s1105_s16 }
  0x6a   : > { %p1109_p10 = pneg %p1108_p8  ;;  %p1115_p3 = por %p1114_p4, %p1113_p6 }
  0x6c   : > { %p1116_p5 = pnand %p1115_p3, %p1109_p10 }
  0x6e   : > { %1119 = shalt.err (!%p1116_p5)
}
  0x6f   : > { %s1261_s30 = smov 64   ;;  %s1262_s19 = smov 4  }
  0x70   : > { %965 = dma.hbm_to_vmem [thread:$0]  (!%p1360_p13), %s1450_s12, 1024, %s1454_s23, %s1375_s20, %s1261_s30, %s1261_s30, %s1262_s19  }
  0x71   : > { %s1486_s16 = scalar_lea.hbm %s1670_s3, %s882_s1  ;;  %s293_s26 = scalar_lea.vmem [#allocation8], %s846_s17 }
  0x72   : > { %s300_s18 = sshll.u32 %s293_s26, 4  ;;  %s290_s14 = scalar_lea.sflag [#allocation9], %s1358_s10  ;;  %s1490_s18 = int_to_ptr.vmem [resolvable:$true] %s300_s18 }
  0x73   : > { %s1120_s0 = scalar_lea.hbm %s1486_s16, 1024  ;;  %s1125_s1 = scalar_lea.hbm %s1670_s3, 2048 }
  0x74   : > { %p1121_p1 = scmp.ne.s32.totalorder %s1486_s16, %s1120_s0  ;;  %p1126_p0 = scmp.lt.u32.totalorder %s1486_s16, %s1670_s3 }
  0x75   : > { %p1127_p11 = scmp.lt.u32.totalorder %s1125_s1, %s1120_s0  ;;  %p1129_p8 = scmp.lt.u32.totalorder %s1120_s0, %s1486_s16 }
  0x76   : > { %p1123_p7 = pnand %p1121_p1, %p1381_p2 }
  0x77   : > { %p1128_p12 = por %p1127_p11, %p1126_p0 }
  0x78   : > { %p1124_p9 = pneg %p1123_p7 }
  0x79   : > { %p1130_p10 = por %p1129_p8, %p1128_p12 }
  0x7b   : > { %p1131_p6 = pnand %p1130_p10, %p1124_p9 }
  0x7d   : > { %1134 = shalt.err (!%p1131_p6)
}
  0x7e   : > { %s1135_s17 = scalar_lea.vmem %s1490_s18, 1024  ;;  %s1263_s13 = smov [#allocation8]  }
  0x7f   : > { %p1136_p4 = scmp.ne.s32.totalorder %s1490_s18, %s1135_s17  ;;  %s1140_s26 = sshll.u32 %s1263_s13, 4  ;;  %s1141_s26 = int_to_ptr.vmem [resolvable:$false] %s1140_s26 }
  0x80   : > { %s1142_s20 = scalar_lea.vmem %s1141_s26, 2048  ;;  %p1143_p1 = scmp.lt.s32.totalorder %s1490_s18, %s1141_s26 }
  0x81   : > { %p1138_p3 = pnand %p1136_p4, %p1381_p2  ;;  %p1144_p7 = scmp.lt.s32.totalorder %s1142_s20, %s1135_s17 }
  0x83   : > { %p1139_p5 = pneg %p1138_p3  ;;  %p1145_p0 = por %p1144_p7, %p1143_p1 }
  0x85   : > { %p1146_p11 = pnand %p1145_p0, %p1139_p5 }
  0x87   : > { %1149 = shalt.err (!%p1146_p11)
}
  0x88   : > { %968 = dma.hbm_to_vmem [thread:$0]  (!%p1360_p13), %s1486_s16, 1024, %s1490_s18, %s290_s14, %s1261_s30, %s1261_s30, %s1262_s19  }
  0x89   : > { %p1690_p2 = scmp.ne.s32.totalorder %s1688_s15, 0 }
  0x8a   : > { %s1522_s0 = sand.u32 (!%p1690_p2), 1, %s1248_s22   ;;  %p1691_p9 = scmp.ne.s32.totalorder (!%p1690_p2), %s1681_s7, 0 }
  0x8b   : > { %318 = sbr.rel (%p1690_p2) target bundleno = 438 (0x1b6), region = 40  ;;  %s853_s28 = sshll.u32 (!%p1690_p2), %s1522_s0, 3 }
  0x8c   : > { %s321_s11 = scalar_lea.sflag (!%p1690_p2), [#allocation3], %s1522_s0  ;;  %s1528_s12 = scalar_lea.vmem (!%p1690_p2), [#allocation2], %s853_s28 }
  0x92   : > { %1223 = dma.done.wait (%p1691_p9), %s321_s11, 128  }
  0x93   : > { %1225 = vsyncadd (%p1691_p9), %s321_s11, 4294967168  ;;  %s329_s10 = sand.u32 1, %s1324_s25   ;;  %s854_s15 = sshll.u32 %s1522_s0, 1 }
  0x94   : > { %s330_s30 = scalar_lea.sflag [#allocation6], %s329_s10  ;;  %s1538_s19 = scalar_lea.vmem [#allocation5], %s854_s15 }
  0x95   : > { %1227 = dma.done.wait (%p1691_p9), %s330_s30, 1056  }
  0x96   : > { %1229 = vsyncadd (%p1691_p9), %s330_s30, 4294966240  ;;  %s855_s16 = sshll.u32 %s1522_s0, 6  ;;  %s348_s14 = scalar_lea.sflag [#allocation9], %s1522_s0 }
  0x97   : > { %s1545_s18 = scalar_lea.vmem [#allocation7], %s855_s16  ;;  %s1548_s1 = scalar_lea.vmem [#allocation8], %s855_s16 }
  0x98   : > { %1231 = dma.done.wait (%p1691_p9), %s348_s14, 1024  }
  0x99   : > { %1233 = vsyncadd (%p1691_p9), %s348_s14, 4294966272  ;;  %v1264_v0 = vmov 0.0   ;;  %vm1265_vm0 = vmmov 0   ;;  %v1014_v1 = vld [vmem:[%s1548_s1] sm:$0xff]   ;;  %v1016_v3 = vld [vmem:[%s1548_s1 + $0x8] sm:$0xff]   ;;  %p403_p13 = scmp.lt.s32.totalorder %s1324_s25, 1 }
  0x9a   : > { %922 = vmatprep.subr.bf16.mxu1 %v1264_v0  ;;  %902 = vmatprep.subr.bf16.mxu0 %v1264_v0  ;;  %v1015_v2 = vld [vmem:[%s1545_s18] sm:$0xff]   ;;  %v1017_v4 = vld [vmem:[%s1545_s18 + $0x8] sm:$0xff]   ;;  %v1018_v5 = vld [vmem:[%s1548_s1 + $0x10] sm:$0xff]   ;;  %s395_s13 = scalar_lea.vmem [#allocation10], %s853_s28  ;;  %s878_s20 = sshll.u32 %s1324_s25, 7 }
  0x9b   : > { %938 = vmatprep.mubr.msk.bf16.mxu1 %vm1265_vm0, %v1264_v0  ;;  %918 = vmatprep.mubr.msk.bf16.mxu0 %vm1265_vm0, %v1264_v0  ;;  %v1019_v6 = vld [vmem:[%s1545_s18 + $0x10] sm:$0xff]   ;;  %v1020_v7 = vld [vmem:[%s1548_s1 + $0x18] sm:$0xff]   ;;  %v1022_v9 = vld [vmem:[%s1548_s1 + $0x20] sm:$0xff]   ;;  %s404_s7 = scalar_select %p403_p13, %s1324_s25, 1 }
  0x9c   : > { %923 = vmatpush3.bf16.msra.mxu1 %v1014_v1  ;;  %903 = vmatpush3.bf16.msra.mxu0 %v1015_v2  ;;  %v1021_v8 = vld [vmem:[%s1545_s18 + $0x18] sm:$0xff]   ;;  %v1023_v10 = vld [vmem:[%s1545_s18 + $0x20] sm:$0xff]   ;;  %v1024_v11 = vld [vmem:[%s1548_s1 + $0x28] sm:$0xff]   ;;  %s649_s26 = sshll.u32 %s395_s13, 4  ;;  %s1585_s10 = scalar_lea.hbm %s1672_s5, %s878_s20  ;;  %s1580_s26 = int_to_ptr.vmem [resolvable:$true] %s649_s26 }
  0x9d   : > { %924 = vmatprep.subr.bf16.mxu1 %v1264_v0  ;;  %904 = vmatprep.subr.bf16.mxu0 %v1264_v0  ;;  %v1025_v12 = vld [vmem:[%s1545_s18 + $0x28] sm:$0xff]   ;;  %v1026_v13 = vld [vmem:[%s1548_s1 + $0x30] sm:$0xff]   ;;  %v514_v14 = vld [vmem:[%s1538_s19] sm:$0x3]  ;;  %s405_s17 = scalar_lea.vmem %s1671_s4, %s404_s7  ;;  %s879_s28 = sshll.u32 %s1324_s25, 5 }
  0x9e   : > { %v1027_v15 = vld [vmem:[%s1545_s18 + $0x30] sm:$0xff]   ;;  %v515_v16 = vcvt.s32.f32 %v514_v14  ;;  %v1028_v17 = vld [vmem:[%s1548_s1 + $0x38] sm:$0xff]   ;;  %v867_v22 = vld [vmem:[%s405_s17] ss:$0 sm:$0xff]  ;;  %s1590_s30 = scalar_lea.vmem [#allocation11], %s854_s15  ;;  %s631_s16 = scalar_lea.sflag [#allocation4], %s1522_s0 }
  0x9f   : > { %v1029_v18 = vld [vmem:[%s1545_s18 + $0x38] sm:$0xff]   ;;  %s662_s19 = sshll.u32 %s1590_s30, 4  ;;  %s1150_s18 = scalar_lea.vmem %s1580_s26, 128  ;;  %s1624_s19 = int_to_ptr.vmem [resolvable:$true] %s662_s19 }
  0xa0   : > { %925 = vmatpush3.bf16.msra.mxu1 %v1016_v3  ;;  %905 = vmatpush3.bf16.msra.mxu0 %v1017_v4  ;;  %v407_v19 = vld [vmem:[%s1528_s12] sm:$0xff]  ;;  %v516_v20 = vpack.c.bf16 %v515_v16, %v515_v16  ;;  %p1151_p12 = scmp.ne.s32.totalorder %s1580_s26, %s1150_s18  ;;  %p1692_p8 = scmp.ne.s32.totalorder %s1682_s8, 0 }
  0xa1   : > { %926 = vmatprep.subr.bf16.mxu1 %v1264_v0  ;;  %906 = vmatprep.subr.bf16.mxu0 %v1264_v0  ;;  %v408_v21 = vpack.c.bf16 %v407_v19, %v407_v19  ;;  %s1266_s14 = smov [#allocation10]  }
  0xa2   : > { %p1152_p10 = pnand %p1151_p12, %p1692_p8  ;;  %s1154_s1 = sshll.u32 %s1266_s14, 4  ;;  %s1155_s1 = int_to_ptr.vmem [resolvable:$false] %s1154_s1 }
  0xa3   : > { %s1156_s7 = scalar_lea.vmem %s1155_s1, 256  ;;  %p1157_p4 = scmp.lt.s32.totalorder %s1580_s26, %s1155_s1 }
  0xa4   : > { %927 = vmatpush3.bf16.msra.mxu1 %v1018_v5  ;;  %907 = vmatpush3.bf16.msra.mxu0 %v1019_v6  ;;  %p1153_p6 = pneg %p1152_p10  ;;  %p1158_p3 = scmp.lt.s32.totalorder %s1156_s7, %s1150_s18 }
  0xa5   : > { %928 = vmatprep.subr.bf16.mxu1 %v1264_v0  ;;  %908 = vmatprep.subr.bf16.mxu0 %v1264_v0 }
  0xa6   : > { %p1159_p5 = por %p1158_p3, %p1157_p4 }
  0xa8   : > { %929 = vmatpush3.bf16.msra.mxu1 %v1020_v7  ;;  %909 = vmatpush3.bf16.msra.mxu0 %v1021_v8  ;;  %p1160_p1 = pnand %p1159_p5, %p1153_p6 }
  0xa9   : > { %930 = vmatprep.subr.bf16.mxu1 %v1264_v0  ;;  %910 = vmatprep.subr.bf16.mxu0 %v1264_v0 }
  0xac   : > { %931 = vmatpush3.bf16.msra.mxu1 %v1022_v9  ;;  %911 = vmatpush3.bf16.msra.mxu0 %v1023_v10 }
  0xad   : > { %932 = vmatprep.subr.bf16.mxu1 %v1264_v0  ;;  %912 = vmatprep.subr.bf16.mxu0 %v1264_v0 }
  0xb0   : > { %933 = vmatpush3.bf16.msra.mxu1 %v1024_v11  ;;  %913 = vmatpush3.bf16.msra.mxu0 %v1025_v12 }
  0xb1   : > { %934 = vmatprep.subr.bf16.mxu1 %v1264_v0  ;;  %914 = vmatprep.subr.bf16.mxu0 %v1264_v0 }
  0xb4   : > { %935 = vmatpush3.bf16.msra.mxu1 %v1026_v13  ;;  %915 = vmatpush3.bf16.msra.mxu0 %v1027_v15 }
  0xb5   : > { %936 = vmatprep.subr.bf16.mxu1 %v1264_v0  ;;  %916 = vmatprep.subr.bf16.mxu0 %v1264_v0 }
  0xb8   : > { %937 = vmatpush3.bf16.msra.mxu1 %v1028_v17  ;;  %917 = vmatpush3.bf16.msra.mxu0 %v1029_v18 }
  0xbb   : > { %939 = vmatmul.mubr.bf16.vlgmr.msra.gmra.mrb[0].mxu1 %v516_v20  ;;  %919 = vmatmul.mubr.bf16.vlgmr.msra.gmra.mrb[0].mxu0 %v408_v21 }
 0x18e   : > { %v622_v23 = vpop.f32.mrb[0].mxu1  ;;  %v507_v26 = vpop.f32.mrb[0].mxu0 }
 0x18f   : > { %v623_v24 = vadd.f32 %v867_v22, %v622_v23  ;;  %v940_v25 = vpop.f32.mrb[1].mxu1  ;;  %513 = vst [vmem:[%s395_s13] sm:$0xff] %v507_v26  ;;  %v920_v28 = vpop.f32.mrb[1].mxu0 }
 0x190   : > { %v625_v27 = vpop.f32.mrb[2].mxu1  ;;  %v510_v31 = vpop.f32.mrb[2].mxu0 }
 0x191   : > { %v942_v29 = vtrunc.f32 %v623_v24  ;;  %v941_v30 = vpop.f32.mrb[3].mxu1 }
 0x192   : > { %1163 = shalt.err (!%p1160_p1)
}
 0x193   : > { %s1164_s15 = scalar_lea.hbm %s1585_s10, 128  ;;  %s1168_s17 = scalar_lea.hbm %s1672_s5, 256 }
 0x194   : > { %p1165_p7 = scmp.ne.s32.totalorder %s1585_s10, %s1164_s15  ;;  %p1169_p2 = scmp.lt.u32.totalorder %s1585_s10, %s1672_s5 }
 0x195   : > { %p1170_p9 = scmp.lt.u32.totalorder %s1168_s17, %s1164_s15  ;;  %p1172_p12 = scmp.lt.u32.totalorder %s1164_s15, %s1585_s10 }
 0x196   : > { %p1166_p0 = pnand %p1165_p7, %p1692_p8 }
 0x197   : > { %p1171_p13 = por %p1170_p9, %p1169_p2 }
 0x198   : > { %p1167_p11 = pneg %p1166_p0 }
 0x199   : > { %p1173_p10 = por %p1172_p12, %p1171_p13 }
 0x19b   : > { %p1174_p6 = pnand %p1173_p10, %p1167_p11 }
 0x19d   : > { %1177 = shalt.err (!%p1174_p6)
}
 0x19e   : > { %952 = dma.vmem_to_hbm [thread:$0]  (%p1692_p8), %s1580_s26, 128, %s1585_s10, %s631_s16   ;;  %v921_v32 = vpop.f32.mrb[3].mxu0  ;;  %v943_v33 = vcvt.f32.s32 %v942_v29 }
 0x19f   : > { %s1620_s18 = scalar_lea.hbm %s1673_s6, %s879_s28  ;;  %s636_s14 = scalar_lea.sflag [#allocation12], %s1522_s0 }
 0x1a0   : > { %629 = vst [vmem:[%s1590_s30] sm:$0x3] %v943_v33  ;;  %s1178_s1 = scalar_lea.vmem %s1624_s19, 32  ;;  %s1267_s26 = smov [#allocation11]  }
 0x1a1   : > { %p1179_p4 = scmp.ne.s32.totalorder %s1624_s19, %s1178_s1  ;;  %s1182_s25 = sshll.u32 %s1267_s26, 4  ;;  %s1183_s25 = int_to_ptr.vmem [resolvable:$false] %s1182_s25 }
 0x1a2   : > { %s1184_s10 = scalar_lea.vmem %s1183_s25, 64  ;;  %p1185_p1 = scmp.lt.s32.totalorder %s1624_s19, %s1183_s25 }
 0x1a3   : > { %p1180_p3 = pnand %p1179_p4, %p1692_p8  ;;  %p1186_p7 = scmp.lt.s32.totalorder %s1184_s10, %s1178_s1 }
 0x1a5   : > { %p1181_p5 = pneg %p1180_p3  ;;  %p1187_p0 = por %p1186_p7, %p1185_p1 }
 0x1a7   : > { %p1188_p11 = pnand %p1187_p0, %p1181_p5 }
 0x1a9   : > { %1191 = shalt.err (!%p1188_p11)
}
 0x1aa   : > { %s1192_s0 = scalar_lea.hbm %s1620_s18, 32  ;;  %s1196_s16 = scalar_lea.hbm %s1673_s6, 64 }
 0x1ab   : > { %p1193_p2 = scmp.ne.s32.totalorder %s1620_s18, %s1192_s0  ;;  %p1197_p12 = scmp.lt.u32.totalorder %s1620_s18, %s1673_s6 }
 0x1ac   : > { %p1198_p10 = scmp.lt.u32.totalorder %s1196_s16, %s1192_s0  ;;  %p1200_p4 = scmp.lt.u32.totalorder %s1192_s0, %s1620_s18 }
 0x1ad   : > { %p1194_p9 = pnand %p1193_p2, %p1692_p8 }
 0x1ae   : > { %p1199_p6 = por %p1198_p10, %p1197_p12 }
 0x1af   : > { %p1195_p13 = pneg %p1194_p9 }
 0x1b0   : > { %p1201_p3 = por %p1200_p4, %p1199_p6 }
 0x1b2   : > { %p1202_p5 = pnand %p1201_p3, %p1195_p13 }
 0x1b4   : > { %1205 = shalt.err (!%p1202_p5)
}
 0x1b5   : > { %953 = dma.vmem_to_hbm [thread:$0]  (%p1692_p8), %s1624_s19, 32, %s1620_s18, %s636_s14  }
 0x1b6 PF: > { %s674_s23 = sand.u32 1, %s1244_s21   ;;  %p1693_p1 = scmp.ne.s32.totalorder %s1683_s9, 0 }
 0x1b7   : > { %p1694_p7 = scmp.ge.s32.totalorder %s1256_s24, 2  ;;  %s675_s29 = scalar_lea.sflag [#allocation4], %s674_s23 }
 0x1b9   : > { %p970_p0 = pnand %p1694_p7, %p1693_p1 }
 0x1bb   : > { %1235 = dma.done.wait (!%p970_p0), %s675_s29, 128  }
 0x1bc   : > { %1237 = vsyncadd (!%p970_p0), %s675_s29, 4294967168  ;;  %s684_s17 = scalar_lea.sflag [#allocation12], %s674_s23 }
 0x1bd   : > { %1239 = dma.done.wait (!%p970_p0), %s684_s17, 32  }
 0x1be   : > { %1241 = vsyncadd (!%p970_p0), %s684_s17, 4294967264  ;;  %s1695_s8 = sld [smem:[#allocation18_spill]]  ;;  %s1696_s23 = sld [smem:[#allocation19_spill]] }
 0x1bf   : > { %p29_p8 = scmp.ge.s32.totalorder %s1328_s27, 4   ;;  %s1697_s21 = smov %s1248_s22 }
 0x1c0   : > { %s1699_s24 = smov %s1328_s27 }
 0x1c1   :  { %31 = sbr.rel (!%p29_p8) target bundleno = 14 (0xe), region = 142 }
 0x1c4   : > { %s1698_s22 = smov %s1695_s8 }
 0x1c8   :  { %689 = vsyncpa [#allocation3], 1 }
 0x1c9   :  { %691 = vsyncpa [#allocation3 + $0x1], 1 }
 0x1ca   :  { %692 = vsyncpa [#allocation6], 1 }
 0x1cb   :  { %694 = vsyncpa [#allocation6 + $0x1], 1 }
 0x1cc   :  { %695 = vsyncpa [#allocation9], 1 }
 0x1cd   :  { %697 = vsyncpa [#allocation9 + $0x1], 1 }
 0x1ce   :  { %698 = vsyncpa [#allocation4], 1 }
 0x1cf   :  { %700 = vsyncpa [#allocation4 + $0x1], 1 }
 0x1d0   :  { %701 = vsyncpa [#allocation12], 1 }
 0x1d1   :  { %703 = vsyncpa [#allocation12 + $0x1], 1 }

</bundles_post_ra>
